<compile_context>
chip_gen: v7x
topology: tpu7x:2x2x1
jax: 0.10.0
libtpu: 0.0.40
codegen_flags: <defaults>
</compile_context>

<pallas_src>
import functools

import jax
import jax.numpy as jnp
from jax.experimental import pallas as pl
from jax.experimental.pallas import tpu as pltpu

LANE = 128
SUBLANE = 8
_VMEM_LIMIT = 32 * 1024 * 1024


def _round_up(n, m):
    return ((n + m - 1) // m) * m


def _pick_b_tile(n, bytes_per_sample, budget=8 * 1024 * 1024):
    best = 1
    for d in range(1, n + 1):
        if n % d == 0 and d * bytes_per_sample <= budget:
            best = d
    return best


# --------------------------------------------------------------------------
# Kernel 1: conv over K taps (bf16 operands, f32 accumulation)
#           [+ optional fused BN affine + LeakyReLU on the input]
#           + per-channel partial sum / sum-of-squares for BatchNorm
#           + halo-padded output written in-kernel.
# Grid: (N // B_tile,), fully parallel (no cross-step state).
# --------------------------------------------------------------------------
def _conv_stage_kernel(x_ref, w_ref, sc_ref, sh_ref, y_ref, sum_ref, ssq_ref, *,
                       K, stride, L_out, L_conv, Lc_pad, tap_base,
                       in_front, in_L_valid, apply_in_act, alpha,
                       out_front, out_total):
    x = x_ref[...].astype(jnp.float32)                     # (B, Lp_in, C_in)

    if apply_in_act:
        # Fused BatchNorm affine + LeakyReLU of the previous stage.
        sc = sc_ref[...].reshape(1, 1, -1)
        sh = sh_ref[...].reshape(1, 1, -1)
        x = x * sc + sh
        x = jnp.where(x >= 0, x, alpha * x)
        # Re-zero the halo / alignment rows so the BN shift does not leak
        # into the convolution's zero padding.
        row = jax.lax.broadcasted_iota(jnp.int32, x.shape, 1)
        x = jnp.where((row >= in_front) & (row < in_front + in_L_valid), x, 0.0)

    B = x.shape[0]
    C_in = x.shape[-1]
    Cout_p = y_ref.shape[-1]

    # K tap-shifted matmuls on a flattened (B*Lc_pad, C_in) LHS.  bf16
    # operands feed the MXU; accumulation stays in f32.  (Conv bias omitted:
    # training-mode BatchNorm cancels a constant per-channel bias exactly.)
    acc = jnp.zeros((B * Lc_pad, Cout_p), jnp.float32)
    for t in range(K):                                     # K is small (3/5) -> unrolled
        xt = x[:, tap_base + t:tap_base + t + Lc_pad, :]   # (B, Lc_pad, C_in)
        xt = xt.reshape(B * Lc_pad, C_in).astype(jnp.bfloat16)
        acc = acc + jnp.dot(xt, w_ref[t], preferred_element_type=jnp.float32)

    acc = acc.reshape(B, Lc_pad, Cout_p)
    if stride == 1:
        if L_conv != Lc_pad:
            acc = acc[:, :L_conv, :]
    else:
        # Single hoisted subsample instead of K strided loads.
        acc = acc[:, :L_conv:stride, :]
    # acc: (B, L_out, Cout_p), f32.

    # Per-channel partial BatchNorm statistics for this grid step (reduced in
    # the wrapper).  Replicated over 8 sublanes to keep the stats block
    # (1, 8, Cout_p) tiling-legal.
    s = jnp.sum(jnp.sum(acc, axis=1, keepdims=True), axis=0)         # (1, Cout_p)
    q = jnp.sum(jnp.sum(acc * acc, axis=1, keepdims=True), axis=0)   # (1, Cout_p)
    sum_ref[...] = jnp.broadcast_to(s.reshape(1, 1, -1), sum_ref.shape)
    ssq_ref[...] = jnp.broadcast_to(q.reshape(1, 1, -1), ssq_ref.shape)

    # Store the body plus the zero halo / alignment rows of the NEXT stage's
    # input buffer directly (no wrapper pad pass).  out_front is sublane
    # aligned so all stores are aligned f32 stores.
    body = acc.astype(y_ref.dtype)
    if out_front > 0:
        y_ref[:, 0:out_front, :] = jnp.zeros((B, out_front, Cout_p), y_ref.dtype)
    y_ref[:, out_front:out_front + L_out, :] = body
    tail = out_total - out_front - L_out
    if tail > 0:
        y_ref[:, out_front + L_out:out_total, :] = jnp.zeros(
            (B, tail, Cout_p), y_ref.dtype)


def conv_bn_stats_stage(xp, w_taps, in_scale, in_shift, *, b_tile, K, stride,
                        L_out, L_conv, Lc_pad, tap_base, in_front, in_L_valid,
                        apply_in_act, alpha, out_front, out_total):
    """xp: (N, Lp_in, C_in). Returns (y (N, out_total, Cout_p), sum, ssq)."""
    N, Lp_in, C_in = xp.shape
    Cout_p = w_taps.shape[-1]
    G = N // b_tile

    kernel = functools.partial(
        _conv_stage_kernel, K=K, stride=stride, L_out=L_out, L_conv=L_conv,
        Lc_pad=Lc_pad, tap_base=tap_base, in_front=in_front,
        in_L_valid=in_L_valid, apply_in_act=apply_in_act, alpha=alpha,
        out_front=out_front, out_total=out_total)

    return pl.pallas_call(
        kernel,
        out_shape=(
            jax.ShapeDtypeStruct((N, out_total, Cout_p), jnp.float32),
            jax.ShapeDtypeStruct((G, SUBLANE, Cout_p), jnp.float32),
            jax.ShapeDtypeStruct((G, SUBLANE, Cout_p), jnp.float32),
        ),
        grid_spec=pltpu.PrefetchScalarGridSpec(
            num_scalar_prefetch=0,
            grid=(G,),
            in_specs=[
                pl.BlockSpec((b_tile, Lp_in, C_in), lambda i: (i, 0, 0)),
                pl.BlockSpec((K, C_in, Cout_p), lambda i: (0, 0, 0)),
                pl.BlockSpec((1, C_in), lambda i: (0, 0)),
                pl.BlockSpec((1, C_in), lambda i: (0, 0)),
            ],
            out_specs=(
                pl.BlockSpec((b_tile, out_total, Cout_p), lambda i: (i, 0, 0)),
                pl.BlockSpec((1, SUBLANE, Cout_p), lambda i: (i, 0, 0)),
                pl.BlockSpec((1, SUBLANE, Cout_p), lambda i: (i, 0, 0)),
            ),
        ),
        compiler_params=pltpu.CompilerParams(
            dimension_semantics=("parallel",),
            vmem_limit_bytes=_VMEM_LIMIT),
    )(xp, w_taps, in_scale, in_shift)


# --------------------------------------------------------------------------
# Kernel 2: fused BatchNorm affine + LeakyReLU + MaxPool1d(2) (floor; drops
# the trailing element for odd length, matching PyTorch).
# --------------------------------------------------------------------------
def _bn_act_pool_kernel(y_ref, sc_ref, sh_ref, o_ref, *, L_pool, alpha):
    y = y_ref[...].astype(jnp.float32)                     # (B, L, C)
    sc = sc_ref[...].reshape(1, 1, -1)
    sh = sh_ref[...].reshape(1, 1, -1)
    y = y * sc + sh
    y = jnp.where(y >= 0, y, alpha * y)
    B = y.shape[0]
    C = y.shape[-1]
    y = y[:, :2 * L_pool, :].reshape(B, L_pool, 2, C)      # pairs along sublanes
    o_ref[...] = jnp.max(y, axis=2).astype(o_ref.dtype)


def bn_act_pool(y, scale, shift, *, b_tile, L_pool, alpha):
    N, L, C = y.shape
    G = N // b_tile
    kernel = functools.partial(_bn_act_pool_kernel, L_pool=L_pool, alpha=alpha)
    return pl.pallas_call(
        kernel,
        out_shape=jax.ShapeDtypeStruct((N, L_pool, C), jnp.float32),
        grid_spec=pltpu.PrefetchScalarGridSpec(
            num_scalar_prefetch=0,
            grid=(G,),
            in_specs=[
                pl.BlockSpec((b_tile, L, C), lambda i: (i, 0, 0)),
                pl.BlockSpec((1, C), lambda i: (0, 0)),
                pl.BlockSpec((1, C), lambda i: (0, 0)),
            ],
            out_specs=pl.BlockSpec((b_tile, L_pool, C), lambda i: (i, 0, 0)),
        ),
        compiler_params=pltpu.CompilerParams(
            dimension_semantics=("parallel",),
            vmem_limit_bytes=_VMEM_LIMIT),
    )(y, scale, shift)


# --------------------------------------------------------------------------
# Python wrapper = CNNBlock.forward (training mode).
# --------------------------------------------------------------------------
def cnn_block_forward(x, params, *, blocktype, kernel_size, stride,
                      alpha=0.3, eps=1e-5, b_tile=None):
    """x: (N, Cin, L) like PyTorch.  params: list of per-stage dicts with
    'w' (Cout,Cin,K), 'b' (Cout,), 'gamma' (Cout,), 'beta' (Cout,)."""
    assert len(params) == (2 if blocktype == "lenet" else 1)
    N, Cin, L = x.shape
    K = kernel_size
    pad = (K - 1) // 2
    front = _round_up(pad, SUBLANE)   # sublane-aligned halo -> aligned in-kernel stores

    # ---- per-stage geometry plan ----
    plan = []
    L_real = L
    for p in params:
        Cout = p["w"].shape[0]
        Cout_p = _round_up(Cout, LANE)
        L_out = (L_real + 2 * pad - K) // stride + 1
        L_conv = (L_out - 1) * stride + 1                 # stride-1 rows computed
        Lc_pad = _round_up(L_conv, SUBLANE)
        Lp_in = _round_up(max(front + L_real,
                              front - pad + (K - 1) + Lc_pad), SUBLANE)
        plan.append(dict(Cout=Cout, Cout_p=Cout_p, L_out=L_out,
                         L_conv=L_conv, Lc_pad=Lc_pad, Lp_in=Lp_in))
        L_real = L_out
    for si, st in enumerate(plan):
        if si + 1 < len(plan):
            st["out_front"], st["out_total"] = front, plan[si + 1]["Lp_in"]
        else:
            st["out_front"], st["out_total"] = 0, st["L_out"]

    def stage_cin(si):
        return Cin if si == 0 else plan[si - 1]["Cout_p"]

    if b_tile is None:
        per_sample = max(
            4 * (st["Lp_in"] * stage_cin(si) + st["out_total"] * st["Cout_p"]) * 4
            for si, st in enumerate(plan))
        b_tile = _pick_b_tile(N, per_sample)
    assert N % b_tile == 0, "b_tile must divide the batch size"

    # Stage-0 input: NCL -> NLC, halo + alignment rows of zeros, TRUE channel
    # count (no 128-lane amplification of the input DMA).
    cur = jnp.transpose(x, (0, 2, 1)).astype(jnp.float32)
    cur = jnp.pad(cur, ((0, 0), (front, plan[0]["Lp_in"] - front - L), (0, 0)))
    in_scale = jnp.ones((1, Cin), jnp.float32)
    in_shift = jnp.zeros((1, Cin), jnp.float32)
    apply_in_act = False
    in_L_valid = L

    last = None
    for si, p in enumerate(params):
        st = plan[si]
        Cout, Cout_p = st["Cout"], st["Cout_p"]
        C_in_stage = cur.shape[-1]

        # Weight taps: (K, C_in_stage, Cout_p) in bf16, zero-padded channels.
        w = p["w"].astype(jnp.float32)                     # (Cout, Cin_s, K)
        w_t = jnp.transpose(w, (2, 1, 0))                  # (K, Cin_s, Cout)
        w_t = jnp.pad(w_t, ((0, 0), (0, C_in_stage - w.shape[1]),
                            (0, Cout_p - Cout))).astype(jnp.bfloat16)
        # NOTE: conv bias p['b'] is intentionally not applied in the kernel;
        # training-mode BatchNorm cancels a constant per-channel bias exactly.

        y, s, ss = conv_bn_stats_stage(
            cur, w_t, in_scale, in_shift, b_tile=b_tile, K=K, stride=stride,
            L_out=st["L_out"], L_conv=st["L_conv"], Lc_pad=st["Lc_pad"],
            tap_base=front - pad, in_front=front, in_L_valid=in_L_valid,
            apply_in_act=apply_in_act, alpha=alpha,
            out_front=st["out_front"], out_total=st["out_total"])

        # Training-mode BatchNorm affine from exact global batch statistics.
        # TODO(synk): E[x^2]-E[x]^2 can lose precision when |mean| >> std; a
        # pilot-mean / Welford accumulation would be more robust.
        count = float(N * st["L_out"])
        s_tot = jnp.sum(s[:, 0, :], axis=0)
        q_tot = jnp.sum(ss[:, 0, :], axis=0)
        mean = s_tot / count
        var = jnp.maximum(q_tot / count - mean * mean, 0.0)           # biased var
        inv = jax.lax.rsqrt(var + eps)
        gamma_p = jnp.pad(p["gamma"].astype(jnp.float32), (0, Cout_p - Cout))
        beta_p = jnp.pad(p["beta"].astype(jnp.float32), (0, Cout_p - Cout))
        scale = (gamma_p * inv).reshape(1, Cout_p)
        shift = (beta_p - mean * gamma_p * inv).reshape(1, Cout_p)

        if si + 1 < len(params):
            cur = y                      # already halo-padded by the kernel
            in_scale, in_shift = scale, shift
            apply_in_act = True
            in_L_valid = st["L_out"]
        else:
            last = (y, scale, shift, st["L_out"], Cout)

    # Final fused BN + LeakyReLU + MaxPool1d(2).
    y_last, scale, shift, L_out_last, Cout_last = last
    L_pool = L_out_last // 2
    pooled = bn_act_pool(y_last, scale, shift, b_tile=b_tile,
                         L_pool=L_pool, alpha=alpha)
    return jnp.transpose(pooled[:, :, :Cout_last], (0, 2, 1))          # (N, Cout, L_pool)


# --------------------------------------------------------------------------
# Pure-JAX reference (mirrors the PyTorch module in training mode).
# --------------------------------------------------------------------------
def reference_forward(x, params, *, kernel_size, stride, alpha=0.3, eps=1e-5):
    pad = (kernel_size - 1) // 2
    y = x.astype(jnp.float32)
    for p in params:
        w, b = p["w"].astype(jnp.float32), p["b"].astype(jnp.float32)
        gamma, beta = p["gamma"].astype(jnp.float32), p["beta"].astype(jnp.float32)
        y = jax.lax.conv_general_dilated(
            y, w, window_strides=(stride,), padding=[(pad, pad)],
            dimension_numbers=("NCH", "OIH", "NCH"))
        y = y + b[None, :, None]
        mean = jnp.mean(y, axis=(0, 2), keepdims=True)
        var = jnp.mean((y - mean) ** 2, axis=(0, 2), keepdims=True)
        y = (y - mean) * jax.lax.rsqrt(var + eps)
        y = y * gamma[None, :, None] + beta[None, :, None]
        y = jnp.where(y >= 0, y, alpha * y)
    Lo = y.shape[-1]
    Lp = (Lo // 2) * 2
    y = y[..., :Lp].reshape(y.shape[0], y.shape[1], Lo // 2, 2)
    return jnp.max(y, axis=-1)


if __name__ == "__main__":
    key = jax.random.PRNGKey(0)
    N, Cin, L = 4, 4, 16
    Cout, K, stride = 8, 3, 1

    k1, k2, k3, k4, k5 = jax.random.split(key, 5)
    # normal_init semantics: conv weight ~ N(0, 0.05), BN weight 1, bias 0.
    # Conv biases are given small nonzero values to exercise the fact that
    # training-mode BatchNorm cancels them exactly.
    params = [
        dict(w=0.05 * jax.random.normal(k1, (Cout, Cin, K), jnp.float32),
             b=0.1 * jax.random.normal(k4, (Cout,), jnp.float32),
             gamma=jnp.ones((Cout,), jnp.float32),
             beta=jnp.zeros((Cout,), jnp.float32)),
        dict(w=0.05 * jax.random.normal(k2, (Cout, Cout, K), jnp.float32),
             b=0.1 * jax.random.normal(k5, (Cout,), jnp.float32),
             gamma=jnp.ones((Cout,), jnp.float32),
             beta=jnp.zeros((Cout,), jnp.float32)),
    ]
    x = jax.random.normal(k3, (N, Cin, L), jnp.float32)

    out = cnn_block_forward(x, params, blocktype="lenet",
                            kernel_size=K, stride=stride, b_tile=2)
    out = jax.block_until_ready(out)

    ref = jax.block_until_ready(
        reference_forward(x, params, kernel_size=K, stride=stride))

    assert out.shape == ref.shape, (out.shape, ref.shape)
    diff = jnp.abs(out - ref)
    tol = 5e-2 + 5e-2 * jnp.abs(ref)   # bf16 matmul operands vs f32 reference
    if not bool(jnp.all(diff <= tol)):
        raise AssertionError(
            f"mismatch vs reference: max abs err {float(jnp.max(diff)):.4e}")
    print("KERNEL_OK")
</pallas_src>

<mosaic_0001>
module attributes {stable_mosaic.version = 11 : i64} {
  func.func @_conv_stage_kernel(%arg0: i32, %arg1: memref<2x32x4xf32, #tpu.memory_space<vmem>>, %arg2: memref<3x4x128xbf16, #tpu.memory_space<vmem>>, %arg3: memref<1x4xf32, #tpu.memory_space<vmem>>, %arg4: memref<1x4xf32, #tpu.memory_space<vmem>>, %arg5: memref<2x32x128xf32, #tpu.memory_space<vmem>>, %arg6: memref<1x8x128xf32, #tpu.memory_space<vmem>>, %arg7: memref<1x8x128xf32, #tpu.memory_space<vmem>>) attributes {dimension_semantics = [#tpu.dimension_semantics<parallel>], iteration_bounds = array<i64: 2>, scalar_prefetch = 0 : i64, scratch_operands = 0 : i64, tpu.core_type = #tpu.core_type<tc>, window_params = [{transform_indices = @transform_0, window_bounds = array<i64: 2, 32, 4>}, {pipeline_mode = #tpu.pipeline_mode<synchronous>, transform_indices = @transform_1, window_bounds = array<i64: 3, 4, 128>}, {pipeline_mode = #tpu.pipeline_mode<synchronous>, transform_indices = @transform_2, window_bounds = array<i64: 1, 4>}, {pipeline_mode = #tpu.pipeline_mode<synchronous>, transform_indices = @transform_3, window_bounds = array<i64: 1, 4>}, {transform_indices = @transform_4, window_bounds = array<i64: 2, 32, 128>}, {transform_indices = @transform_5, window_bounds = array<i64: 1, 8, 128>}, {transform_indices = @transform_6, window_bounds = array<i64: 1, 8, 128>}]} {
    %c0 = arith.constant 0 : index
    %c0_0 = arith.constant 0 : index
    %c0_1 = arith.constant 0 : index
    %0 = vector.load %arg1[%c0, %c0_0, %c0_1] : memref<2x32x4xf32, #tpu.memory_space<vmem>>, vector<2x32x4xf32>
    %cst = arith.constant 0.000000e+00 : f32
    %1 = vector.broadcast %cst : f32 to vector<32x128xf32>
    %2 = vector.extract_strided_slice %0 {offsets = [0, 7, 0], sizes = [2, 16, 4], strides = [1, 1, 1]} : vector<2x32x4xf32> to vector<2x16x4xf32>
    %3 = vector.shape_cast %2 : vector<2x16x4xf32> to vector<32x4xf32>
    %4 = arith.truncf %3 : vector<32x4xf32> to vector<32x4xbf16>
    %c0_2 = arith.constant 0 : index
    %c0_3 = arith.constant 0 : index
    %c0_4 = arith.constant 0 : index
    %5 = vector.load %arg2[%c0_2, %c0_3, %c0_4] : memref<3x4x128xbf16, #tpu.memory_space<vmem>>, vector<1x4x128xbf16>
    %6 = vector.shape_cast %5 : vector<1x4x128xbf16> to vector<4x128xbf16>
    %cst_5 = arith.constant dense<0.000000e+00> : vector<32x128xf32>
    %7 = tpu.matmul %4, %6, %cst_5 {dimension_numbers = #tpu.dot_dimension_numbers<[1], [0], [0], [1], [0, 0, 1, 1], [], []>} : vector<32x4xbf16>, vector<4x128xbf16>, vector<32x128xf32> -> vector<32x128xf32>
    %8 = arith.addf %1, %7 : vector<32x128xf32>
    %9 = vector.extract_strided_slice %0 {offsets = [0, 8, 0], sizes = [2, 16, 4], strides = [1, 1, 1]} : vector<2x32x4xf32> to vector<2x16x4xf32>
    %10 = vector.shape_cast %9 : vector<2x16x4xf32> to vector<32x4xf32>
    %11 = arith.truncf %10 : vector<32x4xf32> to vector<32x4xbf16>
    %c1 = arith.constant 1 : index
    %c0_6 = arith.constant 0 : index
    %c0_7 = arith.constant 0 : index
    %12 = vector.load %arg2[%c1, %c0_6, %c0_7] : memref<3x4x128xbf16, #tpu.memory_space<vmem>>, vector<1x4x128xbf16>
    %13 = vector.shape_cast %12 : vector<1x4x128xbf16> to vector<4x128xbf16>
    %cst_8 = arith.constant dense<0.000000e+00> : vector<32x128xf32>
    %14 = tpu.matmul %11, %13, %cst_8 {dimension_numbers = #tpu.dot_dimension_numbers<[1], [0], [0], [1], [0, 0, 1, 1], [], []>} : vector<32x4xbf16>, vector<4x128xbf16>, vector<32x128xf32> -> vector<32x128xf32>
    %15 = arith.addf %8, %14 : vector<32x128xf32>
    %16 = vector.extract_strided_slice %0 {offsets = [0, 9, 0], sizes = [2, 16, 4], strides = [1, 1, 1]} : vector<2x32x4xf32> to vector<2x16x4xf32>
    %17 = vector.shape_cast %16 : vector<2x16x4xf32> to vector<32x4xf32>
    %18 = arith.truncf %17 : vector<32x4xf32> to vector<32x4xbf16>
    %c2 = arith.constant 2 : index
    %c0_9 = arith.constant 0 : index
    %c0_10 = arith.constant 0 : index
    %19 = vector.load %arg2[%c2, %c0_9, %c0_10] : memref<3x4x128xbf16, #tpu.memory_space<vmem>>, vector<1x4x128xbf16>
    %20 = vector.shape_cast %19 : vector<1x4x128xbf16> to vector<4x128xbf16>
    %cst_11 = arith.constant dense<0.000000e+00> : vector<32x128xf32>
    %21 = tpu.matmul %18, %20, %cst_11 {dimension_numbers = #tpu.dot_dimension_numbers<[1], [0], [0], [1], [0, 0, 1, 1], [], []>} : vector<32x4xbf16>, vector<4x128xbf16>, vector<32x128xf32> -> vector<32x128xf32>
    %22 = arith.addf %15, %21 : vector<32x128xf32>
    %23 = vector.shape_cast %22 : vector<32x128xf32> to vector<2x16x128xf32>
    %cst_12 = arith.constant dense<0.000000e+00> : vector<2x128xf32>
    %24 = vector.multi_reduction <add>, %23, %cst_12 [1] : vector<2x16x128xf32> to vector<2x128xf32>
    %25 = vector.shape_cast %24 : vector<2x128xf32> to vector<2x1x128xf32>
    %cst_13 = arith.constant dense<0.000000e+00> : vector<1x128xf32>
    %26 = vector.multi_reduction <add>, %25, %cst_13 [0] : vector<2x1x128xf32> to vector<1x128xf32>
    %27 = arith.mulf %23, %23 : vector<2x16x128xf32>
    %cst_14 = arith.constant dense<0.000000e+00> : vector<2x128xf32>
    %28 = vector.multi_reduction <add>, %27, %cst_14 [1] : vector<2x16x128xf32> to vector<2x128xf32>
    %29 = vector.shape_cast %28 : vector<2x128xf32> to vector<2x1x128xf32>
    %cst_15 = arith.constant dense<0.000000e+00> : vector<1x128xf32>
    %30 = vector.multi_reduction <add>, %29, %cst_15 [0] : vector<2x1x128xf32> to vector<1x128xf32>
    %31 = vector.shape_cast %26 : vector<1x128xf32> to vector<1x1x128xf32>
    %32 = vector.shape_cast %31 : vector<1x1x128xf32> to vector<1x1x128xf32>
    %33 = vector.broadcast %32 : vector<1x1x128xf32> to vector<1x8x128xf32>
    %c0_16 = arith.constant 0 : index
    %c0_17 = arith.constant 0 : index
    %c0_18 = arith.constant 0 : index
    %34 = vector.load %arg6[%c0_16, %c0_17, %c0_18] : memref<1x8x128xf32, #tpu.memory_space<vmem>>, vector<1x8x128xf32>
    tpu.vector_store %arg6[%c0_16, %c0_17, %c0_18], %33 {strides = array<i32>} : memref<1x8x128xf32, #tpu.memory_space<vmem>>, vector<1x8x128xf32>,
    %35 = vector.shape_cast %30 : vector<1x128xf32> to vector<1x1x128xf32>
    %36 = vector.shape_cast %35 : vector<1x1x128xf32> to vector<1x1x128xf32>
    %37 = vector.broadcast %36 : vector<1x1x128xf32> to vector<1x8x128xf32>
    %c0_19 = arith.constant 0 : index
    %c0_20 = arith.constant 0 : index
    %c0_21 = arith.constant 0 : index
    %38 = vector.load %arg7[%c0_19, %c0_20, %c0_21] : memref<1x8x128xf32, #tpu.memory_space<vmem>>, vector<1x8x128xf32>
    tpu.vector_store %arg7[%c0_19, %c0_20, %c0_21], %37 {strides = array<i32>} : memref<1x8x128xf32, #tpu.memory_space<vmem>>, vector<1x8x128xf32>,
    %cst_22 = arith.constant 0.000000e+00 : f32
    %39 = vector.broadcast %cst_22 : f32 to vector<2x8x128xf32>
    %c0_23 = arith.constant 0 : index
    %c0_24 = arith.constant 0 : index
    %c0_25 = arith.constant 0 : index
    %40 = vector.load %arg5[%c0_23, %c0_24, %c0_25] : memref<2x32x128xf32, #tpu.memory_space<vmem>>, vector<2x8x128xf32>
    tpu.vector_store %arg5[%c0_23, %c0_24, %c0_25], %39 {strides = array<i32>} : memref<2x32x128xf32, #tpu.memory_space<vmem>>, vector<2x8x128xf32>,
    %c0_26 = arith.constant 0 : index
    %c8 = arith.constant 8 : index
    %c0_27 = arith.constant 0 : index
    %41 = vector.load %arg5[%c0_26, %c8, %c0_27] : memref<2x32x128xf32, #tpu.memory_space<vmem>>, vector<2x16x128xf32>
    tpu.vector_store %arg5[%c0_26, %c8, %c0_27], %23 {strides = array<i32>} : memref<2x32x128xf32, #tpu.memory_space<vmem>>, vector<2x16x128xf32>,
    %cst_28 = arith.constant 0.000000e+00 : f32
    %42 = vector.broadcast %cst_28 : f32 to vector<2x8x128xf32>
    %c0_29 = arith.constant 0 : index
    %c24 = arith.constant 24 : index
    %c0_30 = arith.constant 0 : index
    %43 = vector.load %arg5[%c0_29, %c24, %c0_30] : memref<2x32x128xf32, #tpu.memory_space<vmem>>, vector<2x8x128xf32>
    tpu.vector_store %arg5[%c0_29, %c24, %c0_30], %42 {strides = array<i32>} : memref<2x32x128xf32, #tpu.memory_space<vmem>>, vector<2x8x128xf32>,
    return
  }
  func.func @transform_0(%arg0: i32) -> (i32, i32, i32) {
    %c0_i32 = arith.constant 0 : i32
    %c0_i32_0 = arith.constant 0 : i32
    %c0_i32_1 = arith.constant 0 : i32
    return %arg0, %c0_i32, %c0_i32_0 : i32, i32, i32
  }
  func.func @transform_1(%arg0: i32) -> (i32, i32, i32) {
    %c0_i32 = arith.constant 0 : i32
    %c0_i32_0 = arith.constant 0 : i32
    %c0_i32_1 = arith.constant 0 : i32
    %c0_i32_2 = arith.constant 0 : i32
    return %c0_i32, %c0_i32_0, %c0_i32_1 : i32, i32, i32
  }
  func.func @transform_2(%arg0: i32) -> (i32, i32) {
    %c0_i32 = arith.constant 0 : i32
    %c0_i32_0 = arith.constant 0 : i32
    %c0_i32_1 = arith.constant 0 : i32
    return %c0_i32, %c0_i32_0 : i32, i32
  }
  func.func @transform_3(%arg0: i32) -> (i32, i32) {
    %c0_i32 = arith.constant 0 : i32
    %c0_i32_0 = arith.constant 0 : i32
    %c0_i32_1 = arith.constant 0 : i32
    return %c0_i32, %c0_i32_0 : i32, i32
  }
  func.func @transform_4(%arg0: i32) -> (i32, i32, i32) {
    %c0_i32 = arith.constant 0 : i32
    %c0_i32_0 = arith.constant 0 : i32
    %c0_i32_1 = arith.constant 0 : i32
    return %arg0, %c0_i32, %c0_i32_0 : i32, i32, i32
  }
  func.func @transform_5(%arg0: i32) -> (i32, i32, i32) {
    %c0_i32 = arith.constant 0 : i32
    %c0_i32_0 = arith.constant 0 : i32
    %c0_i32_1 = arith.constant 0 : i32
    return %arg0, %c0_i32, %c0_i32_0 : i32, i32, i32
  }
  func.func @transform_6(%arg0: i32) -> (i32, i32, i32) {
    %c0_i32 = arith.constant 0 : i32
    %c0_i32_0 = arith.constant 0 : i32
    %c0_i32_1 = arith.constant 0 : i32
    return %arg0, %c0_i32, %c0_i32_0 : i32, i32, i32
  }
}

</mosaic_0001>

<bundles_post_ra>
// kernel: tpu_custom_call.1
= control target key start
LH: loop header
LB: loop body
LE: loop exit
PB: predicated region body
PF: predicated region fallthrough
CT: control target
= control target key end

     0   :  { %12 = vsyncpa [#allocation3], 0  ;;  %s1242_s0 = inlined_call_operand.vmem [shape: f32[4,32,4], index: 0, kind: input, shape index: {}]   ;;  %s1243_s1 = inlined_call_operand.vmem [shape: bf16[3,4,128], index: 1, kind: input, shape index: {}]   ;;  %s1244_s2 = inlined_call_operand.vmem [shape: f32[1,4], index: 2, kind: input, shape index: {}]   ;;  %s1245_s3 = inlined_call_operand.vmem [shape: f32[1,4], index: 3, kind: input, shape index: {}]   ;;  %s1246_s4 = inlined_call_operand.hbm [shape: f32[4,32,128], index: 4, kind: output, shape index: {0}]   ;;  %s1247_s5 = inlined_call_operand.hbm [shape: f32[2,8,128], index: 5, kind: output, shape index: {1}]   ;;  %s1248_s6 = inlined_call_operand.hbm [shape: f32[2,8,128], index: 6, kind: output, shape index: {2}]  }
   0x1   :  { %14 = vsyncpa [#allocation3 + $0x1], 0 }
   0x2   :  { %15 = vsyncpa [#allocation5], 0 }
   0x3   :  { %17 = vsyncpa [#allocation5 + $0x1], 0  ;;  %s1016_s21 = smov 0   ;;  %s1018_s22 = smov 0  }
   0x4   :  { %s1020_s2 = smov 0   ;;  %s1022_s3 = smov 0  }
   0x5 LB: > { %s1037_s23 = sadd.s32 4294967295, %s973_s3   ;;  %s730_s24 = sadd.s32 4294967294, %s973_s3   ;;  %s973_s3 = sphi %s1022_s3, %s1254_s3   ;;  %s969_s2 = sphi %s1020_s2, %s1253_s2   ;;  %s965_s22 = sphi %s1018_s22, %s1252_s22   ;;  %s961_s21 = sphi %s1016_s21, %s1251_s21  }
   0x6   : > { %s1041_s25 = sadd.s32 1, %s973_s3   ;;  %s119_s26 = sadd.s32 1, %s969_s2 }
   0x7   : > { %s116_s27 = ssub.s32 %s973_s3, %s1041_s25  ;;  %p129_p0 = scmp.ne.s32.totalorder %s969_s2, %s965_s22 }
   0x8   : > { %p117_p1 = scmp.eq.s32.totalorder %s116_s27, 0  ;;  %p130_p2 = scmp.eq.s32.totalorder %s1037_s23, 1 }
   0x9   : > { %p135_p3 = scmp.ne.s32.totalorder %s965_s22, %s961_s21  ;;  %p136_p4 = scmp.eq.s32.totalorder %s730_s24, 1 }
   0xa   : > { %s1054_s28 = scalar_select %p117_p1, %s969_s2, %s119_s26  }
   0xb   : > { %p1056_p5 = por %p130_p2, %p129_p0  ;;  %p1060_p6 = por %p136_p4, %p135_p3 }
   0xc   : > { %p733_p7 = scmp.ge.s32.totalorder %s973_s3, 1  ;;  %p225_p8 = scmp.lt.s32.totalorder %s973_s3, 3 }
   0xe   : > { %p226_p9 = pnand %p733_p7, %p225_p8 }
   0xf   : > { %v306_v0 = vld [vmem:[%s1243_s1] sm:$0x3] (!%p226_p9)  ;;  %vm318_vm0 = vcmask (!%p226_p9), 1041408   ;;  %s737_s9 = sshll.u32 (!%p226_p9), %s1037_s23, 1  ;;  %v745_v2 = vld [vmem:[%s1243_s1 + $0x4] sm:$0x3] (!%p226_p9) }
  0x10   : > { %229 = sbr.rel (%p226_p9) target bundleno = 328 (0x148), region = 36  ;;  %797 = vmatprep.subr.msk.bf16.mxu0 (!%p226_p9), %vm318_vm0, %v306_v0  ;;  %v378_v1 = vsel (!%p226_p9), %vm318_vm0, %v306_v0, 0  ;;  %p267_p10 = scmp.lt.s32.totalorder (!%p226_p9), %s737_s9, 3  ;;  %v740_v3 = vld [vmem:[%s1243_s1 + $0x2] sm:$0x3] (!%p226_p9)  ;;  %vm289_vm1 = vcmask (!%p226_p9), 1040384  }
  0x11   : > { %777 = vmatpush3.bf16.msra.mxu0 (!%p226_p9), %v378_v1  ;;  %796 = vmatprep.subr.msk.bf16.mxu1 (!%p226_p9), %vm318_vm0, %v740_v3  ;;  %v320_v4 = vsel (!%p226_p9), %vm318_vm0, %v740_v3, 0  ;;  %vm311_vm2 = vcmask (!%p226_p9), 31744   ;;  %vm431_vm3 = vcmask (!%p226_p9), 1046528   ;;  %v457_v30 = vsel (!%p226_p9), %vm318_vm0, %v745_v2, 0  ;;  %s1110_s18 = sand.u32 (!%p226_p9), 1, %s965_s22   ;;  %s760_s26 = sshll.u32 (!%p226_p9), %s1037_s23, 10 }
  0x12   : > { %798 = vmatprep.subr.msk.bf16.mxu0 (!%p226_p9), %vm318_vm0, %v745_v2  ;;  %771 = vmatpush3.bf16.msra.mxu1 (!%p226_p9), %v320_v4  ;;  %s734_s19 = sshll.u32 (!%p226_p9), %s1110_s18, 6  ;;  %v975_v40 = vmov (!%p226_p9), 0.0   ;;  %s557_s10 = scalar_lea.sflag (!%p226_p9), [#allocation3], %s1110_s18 }
  0x13   : > { %s1113_s20 = scalar_lea.vmem (!%p226_p9), [#allocation2], %s734_s19  ;;  %s976_s12 = smov (!%p226_p9), [#allocation2]  }
  0x14   : > { %548 = vst [vmem:[%s1113_s20] sm:$0xff] (!%p226_p9), %v975_v40  ;;  %549 = vst [vmem:[%s1113_s20 + $0x20] sm:$0xff] (!%p226_p9), %v975_v40  ;;  %s581_s27 = sshll.u32 (!%p226_p9), %s1113_s20, 4  ;;  %s855_s13 = sshll.u32 (!%p226_p9), %s976_s12, 4  ;;  %s1127_s27 = int_to_ptr.vmem [resolvable:$true] %s581_s27  ;;  %s856_s13 = int_to_ptr.vmem [resolvable:$false] %s855_s13 }
  0x15   : > { %554 = vst [vmem:[%s1113_s20 + $0x18] sm:$0xff] (!%p226_p9), %v975_v40  ;;  %555 = vst [vmem:[%s1113_s20 + $0x38] sm:$0xff] (!%p226_p9), %v975_v40  ;;  %s851_s11 = scalar_lea.vmem (!%p226_p9), %s1127_s27, 1024  ;;  %p858_p0 = scmp.lt.s32.totalorder (!%p226_p9), %s1127_s27, %s856_s13 }
  0x16   : > { %p852_p11 = scmp.ne.s32.totalorder (!%p226_p9), %s1127_s27, %s851_s11 }
  0x17   : > { %s1256_s9 = smov (!%p267_p10, %s737_s9), 3 }
  0x18   : > { %s758_s14 = sshll.u32 %s1256_s9, 5  ;;  %s1125_s9 = scalar_lea.hbm %s1246_s4, %s760_s26 }
  0x19   : > { %s1084_s17 = scalar_lea.vmem %s1242_s0, %s758_s14  ;;  %p853_p12 = pnand %p852_p11, %p1056_p5 }
  0x1a   : > { %v275_v5 = vld [vmem:[%s1084_s17] sm:$0xff]  ;;  %v276_v6 = vld [vmem:[%s1084_s17 + $0x8] sm:$0xff]  ;;  %v277_v7 = vld [vmem:[%s1084_s17 + $0x10] sm:$0xff]  ;;  %s857_s14 = scalar_lea.vmem %s856_s13, 2048 }
  0x1b   : > { %v290_v8 = vrot.slane %v275_v5, 7  ;;  %v291_v9 = vrot.slane %v276_v6, 7  ;;  %v293_v10 = vrot.slane %v277_v7, 7  ;;  %v432_v11 = vrot.slane %v276_v6, 1  ;;  %v279_v12 = vld [vmem:[%s1084_s17 + $0x20] sm:$0xff]  ;;  %v280_v13 = vld [vmem:[%s1084_s17 + $0x28] sm:$0xff]  ;;  %p854_p13 = pneg %p853_p12  ;;  %p859_p1 = scmp.lt.s32.totalorder %s857_s14, %s851_s11 }
  0x1c   : > { %v433_v14 = vrot.slane %v277_v7, 1  ;;  %v281_v15 = vld [vmem:[%s1084_s17 + $0x30] sm:$0xff]  ;;  %v295_v16 = vrot.slane %v279_v12, 7  ;;  %v296_v17 = vrot.slane %v280_v13, 7  ;;  %v307_v18 = vpack.c.bf16 %v277_v7, %v276_v6  ;;  %v278_v19 = vld [vmem:[%s1084_s17 + $0x18] sm:$0xff] }
  0x1d   : > { %v292_v20 = vsel %vm289_vm1, %v290_v8, %v291_v9  ;;  %v294_v21 = vsel %vm289_vm1, %v291_v9, %v293_v10  ;;  %v298_v22 = vrot.slane %v281_v15, 7  ;;  %v308_v23 = vpack.c.bf16 %v281_v15, %v280_v13  ;;  %v282_v32 = vld [vmem:[%s1084_s17 + $0x38] sm:$0xff]  ;;  %p860_p2 = por %p859_p1, %p858_p0 }
  0x1e   : > { %v304_v24 = vpack.c.bf16 %v294_v21, %v292_v20  ;;  %v297_v25 = vsel %vm289_vm1, %v295_v16, %v296_v17  ;;  %772 = vmatprep.mubr.msk.bf16.mxu1 %vm311_vm2, %v307_v18  ;;  %v434_v26 = vsel %vm431_vm3, %v432_v11, %v433_v14  ;;  %v435_v27 = vrot.slane %v278_v19, 1 }
  0x1f   : > { %v299_v28 = vsel %vm289_vm1, %v296_v17, %v298_v22  ;;  %773 = vmatmul.mubr.msk.bf16.vlgmr.msra.gmra.mrb[0].mxu1 %vm311_vm2, %v308_v23  ;;  %v437_v34 = vrot.slane %v280_v13, 1  ;;  %v438_v35 = vrot.slane %v281_v15, 1  ;;  %v440_v36 = vrot.slane %v282_v32, 1  ;;  %p861_p3 = pnand %p860_p2, %p854_p13 }
  0x20   : > { %778 = vmatprep.mubr.msk.bf16.mxu0 %vm311_vm2, %v304_v24  ;;  %v305_v29 = vpack.c.bf16 %v299_v28, %v297_v25  ;;  %v436_v31 = vsel %vm431_vm3, %v433_v14, %v435_v27 }
  0x21   : > { %v446_v33 = vpack.c.bf16 %v436_v31, %v434_v26  ;;  %v439_v37 = vsel %vm431_vm3, %v437_v34, %v438_v35  ;;  %v441_v38 = vsel %vm431_vm3, %v438_v35, %v440_v36 }
  0x22   : > { %779 = vmatmul.mubr.msk.bf16.vlgmr.msra.gmra.mrb[0].mxu0 %vm311_vm2, %v305_v29  ;;  %v447_v39 = vpack.c.bf16 %v441_v38, %v439_v37 }
  0x23   : > { %783 = vmatpush3.bf16.msra.mxu0 %v457_v30  ;;  %784 = vmatprep.mubr.msk.bf16.mxu0 %vm311_vm2, %v446_v33 }
  0x2e   : > { %785 = vmatmul.mubr.msk.bf16.vlgmr.msra.gmra.mrb[0].mxu0 %vm311_vm2, %v447_v39 }
  0xf2   : > { %v774_v41 = vpop.f32.mrb[0].mxu1 }
  0xf3   : > { %v356_v42 = vpop.f32.mrb[1].mxu1 }
  0xf4   : > { %v775_v43 = vpop.f32.mrb[2].mxu1 }
  0xf5   : > { %v359_v44 = vpop.f32.mrb[3].mxu1 }
 0x101   : > { %v786_v45 = vpop.f32.mrb[0].mxu0 }
 0x102   : > { %v788_v46 = vadd.f32 %v786_v45, %v774_v41  ;;  %v493_v47 = vpop.f32.mrb[1].mxu0 }
 0x103   : > { %v789_v48 = vadd.f32 %v493_v47, %v356_v42  ;;  %v787_v49 = vpop.f32.mrb[2].mxu0 }
 0x104   : > { %552 = vst [vmem:[%s1113_s20 + $0x28] sm:$0xff] %v788_v46  ;;  %v790_v50 = vadd.f32 %v787_v49, %v775_v43  ;;  %v496_v51 = vpop.f32.mrb[3].mxu0  ;;  %v529_v53 = vmul.f32 %v788_v46, %v788_v46 }
 0x105   : > { %550 = vst [vmem:[%s1113_s20 + $0x8] sm:$0xff] %v789_v48  ;;  %v791_v52 = vadd.f32 %v496_v51, %v359_v44  ;;  %v527_v56 = vmul.f32 %v789_v48, %v789_v48 }
 0x106   : > { %v519_v54 = vadd.f32 %v790_v50, %v788_v46  ;;  %v530_v55 = vmul.f32 %v790_v50, %v790_v50  ;;  %553 = vst [vmem:[%s1113_s20 + $0x30] sm:$0xff] %v790_v50 }
 0x107   : > { %v512_v57 = vadd.f32 %v791_v52, %v789_v48  ;;  %v528_v58 = vmul.f32 %v791_v52, %v791_v52  ;;  %551 = vst [vmem:[%s1113_s20 + $0x10] sm:$0xff] %v791_v52 }
 0x108   : > { %v520_v59 = vrot.slane %v519_v54, 4  ;;  %v538_v60 = vadd.f32 %v530_v55, %v529_v53 }
 0x109   : > { %864 = shalt.err (!%p861_p3)
}
 0x10a   : > { %s865_s15 = scalar_lea.hbm %s1125_s9, 1024  ;;  %s869_s19 = scalar_lea.hbm %s1246_s4, 2048 }
 0x10b   : > { %p866_p4 = scmp.ne.s32.totalorder %s1125_s9, %s865_s15  ;;  %p870_p9 = scmp.lt.u32.totalorder %s1125_s9, %s1246_s4 }
 0x10c   : > { %p871_p10 = scmp.lt.u32.totalorder %s869_s19, %s865_s15  ;;  %p873_p12 = scmp.lt.u32.totalorder %s865_s15, %s1125_s9 }
 0x10d   : > { %p867_p7 = pnand %p866_p4, %p1056_p5 }
 0x10e   : > { %p872_p11 = por %p871_p10, %p870_p9 }
 0x10f   : > { %p868_p8 = pneg %p867_p7 }
 0x110   : > { %p874_p13 = por %p873_p12, %p872_p11 }
 0x112   : > { %p875_p0 = pnand %p874_p13, %p868_p8 }
 0x114   : > { %878 = shalt.err (!%p875_p0)
}
 0x115   : > { %s977_s7 = smov 128   ;;  %s978_s8 = smov 8   ;;  %v513_v61 = vrot.slane %v512_v57, 4  ;;  %v531_v62 = vadd.f32 %v528_v58, %v527_v56  ;;  %v521_v63 = vadd.f32 %v520_v59, %v519_v54  ;;  %v539_v0 = vrot.slane %v538_v60, 4 }
 0x116   : > { %799 = dma.vmem_to_hbm [thread:$0]  (%p1056_p5), %s1127_s27, 1024, %s1125_s9, %s557_s10, %s977_s7, %s977_s7, %s978_s8  }
 0x117   : > { %v514_v1 = vadd.f32 %v513_v61, %v512_v57  ;;  %v532_v2 = vrot.slane %v531_v62, 4  ;;  %v522_v3 = vrot.slane %v521_v63, 2  ;;  %v540_v4 = vadd.f32 %v539_v0, %v538_v60  ;;  %s735_s11 = sshll.u32 %s1110_s18, 3  ;;  %s561_s27 = sand.u32 1, %s1037_s23  }
 0x118   : > { %s754_s9 = sshll.u32 %s1037_s23, 7  ;;  %s258_s10 = scalar_lea.vmem [#allocation4], %s735_s11 }
 0x119   : > { %v515_v5 = vrot.slane %v514_v1, 2  ;;  %v533_v6 = vadd.f32 %v532_v2, %v531_v62  ;;  %v523_v7 = vadd.f32 %v522_v3, %v521_v63  ;;  %v541_v8 = vrot.slane %v540_v4, 2  ;;  %s597_s12 = sshll.u32 %s258_s10, 4  ;;  %s1159_s18 = scalar_lea.vmem [#allocation6], %s735_s11  ;;  %s1167_s12 = int_to_ptr.vmem [resolvable:$true] %s597_s12 }
 0x11a   : > { %s610_s13 = sshll.u32 %s1159_s18, 4  ;;  %s1165_s16 = scalar_lea.hbm %s1247_s5, %s754_s9  ;;  %s1174_s13 = int_to_ptr.vmem [resolvable:$true] %s610_s13 }
 0x11b   : > { %v516_v9 = vadd.f32 %v515_v5, %v514_v1  ;;  %v534_v10 = vrot.slane %v533_v6, 2  ;;  %v542_v11 = vadd.f32 %v541_v8, %v540_v4  ;;  %v524_v12 = vrot.slane %v523_v7, 1  ;;  %s1172_s19 = scalar_lea.hbm %s1248_s6, %s754_s9  ;;  %s1176_s20 = scalar_lea.sflag [#allocation5], %s561_s27 }
 0x11c   : > { %s879_s26 = scalar_lea.vmem %s1167_s12, 128  ;;  %s979_s7 = smov [#allocation4]  }
 0x11d   : > { %v535_v13 = vadd.f32 %v534_v10, %v533_v6  ;;  %v517_v14 = vrot.slane %v516_v9, 1  ;;  %v525_v15 = vadd.f32 %v524_v12, %v523_v7  ;;  %v543_v16 = vrot.slane %v542_v11, 1  ;;  %p880_p1 = scmp.ne.s32.totalorder %s1167_s12, %s879_s26  ;;  %s883_s8 = sshll.u32 %s979_s7, 4  ;;  %s884_s8 = int_to_ptr.vmem [resolvable:$false] %s883_s8 }
 0x11e   : > { %s885_s11 = scalar_lea.vmem %s884_s8, 256  ;;  %p886_p4 = scmp.lt.s32.totalorder %s1167_s12, %s884_s8 }
 0x11f   : > { %v518_v17 = vadd.f32 %v517_v14, %v516_v9  ;;  %v536_v18 = vrot.slane %v535_v13, 1  ;;  %v544_v19 = vadd.f32 %v543_v16, %v542_v11  ;;  %p881_p2 = pnand %p880_p1, %p1056_p5  ;;  %p887_p7 = scmp.lt.s32.totalorder %s885_s11, %s879_s26 }
 0x121   : > { %v526_v20 = vadd.f32 %v525_v15, %v518_v17  ;;  %v537_v21 = vadd.f32 %v536_v18, %v535_v13  ;;  %p882_p3 = pneg %p881_p2  ;;  %p888_p8 = por %p887_p7, %p886_p4 }
 0x123   : > { %546 = vst [vmem:[%s258_s10] sm:$0xff] %v526_v20  ;;  %v545_v22 = vadd.f32 %v544_v19, %v537_v21  ;;  %p889_p9 = pnand %p888_p8, %p882_p3 }
 0x125   : > { %892 = shalt.err (!%p889_p9)
}
 0x126   : > { %s893_s27 = scalar_lea.hbm %s1165_s16, 128  ;;  %s897_s14 = scalar_lea.hbm %s1247_s5, 256 }
 0x127   : > { %p894_p10 = scmp.ne.s32.totalorder %s1165_s16, %s893_s27  ;;  %p898_p13 = scmp.lt.u32.totalorder %s1165_s16, %s1247_s5 }
 0x128   : > { %p899_p0 = scmp.lt.u32.totalorder %s897_s14, %s893_s27  ;;  %p901_p2 = scmp.lt.u32.totalorder %s893_s27, %s1165_s16 }
 0x129   : > { %p895_p11 = pnand %p894_p10, %p1056_p5 }
 0x12a   : > { %p900_p1 = por %p899_p0, %p898_p13 }
 0x12b   : > { %p896_p12 = pneg %p895_p11 }
 0x12c   : > { %p902_p3 = por %p901_p2, %p900_p1 }
 0x12e   : > { %p903_p4 = pnand %p902_p3, %p896_p12 }
 0x130   : > { %906 = shalt.err (!%p903_p4)
}
 0x131   : > { %800 = dma.vmem_to_hbm [thread:$0]  (%p1056_p5), %s1167_s12, 128, %s1165_s16, %s1176_s20   ;;  %547 = vst [vmem:[%s1159_s18] sm:$0xff] %v545_v22 }
 0x132   : > { %s907_s17 = scalar_lea.vmem %s1174_s13, 128  ;;  %s980_s26 = smov [#allocation6]  }
 0x133   : > { %p908_p7 = scmp.ne.s32.totalorder %s1174_s13, %s907_s17  ;;  %s911_s7 = sshll.u32 %s980_s26, 4  ;;  %s912_s7 = int_to_ptr.vmem [resolvable:$false] %s911_s7 }
 0x134   : > { %s913_s8 = scalar_lea.vmem %s912_s7, 256  ;;  %p914_p10 = scmp.lt.s32.totalorder %s1174_s13, %s912_s7 }
 0x135   : > { %p909_p8 = pnand %p908_p7, %p1056_p5  ;;  %p915_p11 = scmp.lt.s32.totalorder %s913_s8, %s907_s17 }
 0x137   : > { %p910_p9 = pneg %p909_p8  ;;  %p916_p12 = por %p915_p11, %p914_p10 }
 0x139   : > { %p917_p13 = pnand %p916_p12, %p910_p9 }
 0x13b   : > { %920 = shalt.err (!%p917_p13)
}
 0x13c   : > { %s921_s12 = scalar_lea.hbm %s1172_s19, 128  ;;  %s925_s11 = scalar_lea.hbm %s1248_s6, 256 }
 0x13d   : > { %p922_p0 = scmp.ne.s32.totalorder %s1172_s19, %s921_s12  ;;  %p926_p3 = scmp.lt.u32.totalorder %s1172_s19, %s1248_s6 }
 0x13e   : > { %p927_p4 = scmp.lt.u32.totalorder %s925_s11, %s921_s12  ;;  %p929_p8 = scmp.lt.u32.totalorder %s921_s12, %s1172_s19 }
 0x13f   : > { %p923_p1 = pnand %p922_p0, %p1056_p5 }
 0x140   : > { %p928_p7 = por %p927_p4, %p926_p3 }
 0x141   : > { %p924_p2 = pneg %p923_p1 }
 0x142   : > { %p930_p9 = por %p929_p8, %p928_p7 }
 0x144   : > { %p931_p10 = pnand %p930_p9, %p924_p2 }
 0x146   : > { %934 = shalt.err (!%p931_p10)
}
 0x147   : > { %801 = dma.vmem_to_hbm [thread:$0]  (%p1056_p5), %s1174_s13, 128, %s1172_s19, %s1176_s20  }
 0x148 PF: > { %p815_p11 = scmp.ge.s32.totalorder %s973_s3, 2  ;;  %s622_s10 = sand.u32 1, %s961_s21  }
 0x149   : > { %s623_s14 = scalar_lea.sflag [#allocation3], %s622_s10 }
 0x14a   : > { %p806_p12 = pnand %p815_p11, %p1060_p6 }
 0x14c   : > { %952 = dma.done.wait (!%p806_p12), %s623_s14, 1024  }
 0x14d   : > { %954 = vsyncadd (!%p806_p12), %s623_s14, 4294966272  ;;  %s631_s15 = sand.u32 1, %s730_s24  }
 0x14e   : > { %s632_s23 = scalar_lea.sflag [#allocation5], %s631_s15 }
 0x14f   : > { %956 = dma.done.wait (!%p806_p12), %s632_s23, 256  }
 0x150   : > { %958 = vsyncadd (!%p806_p12), %s632_s23, 4294967040  ;;  %p20_p5 = scmp.ge.s32.totalorder %s1041_s25, 4   ;;  %s1251_s21 = smov %s965_s22 }
 0x151   : > { %s1252_s22 = smov %s969_s2  ;;  %s1253_s2 = smov %s1054_s28 }
 0x152   : > { %s1254_s3 = smov %s1041_s25  ;;  %22 = sbr.rel (!%p20_p5) target bundleno = 5 (0x5), region = 105 }
 0x159   :  { %646 = vsyncpa [#allocation3], 1 }
 0x15a   :  { %648 = vsyncpa [#allocation3 + $0x1], 1 }
 0x15b   :  { %649 = vsyncpa [#allocation5], 1 }
 0x15c   :  { %651 = vsyncpa [#allocation5 + $0x1], 1 }

</bundles_post_ra>
